<compile_context>
chip_gen: v5e
topology: v5e:2x2
jax: 0.10.0
libtpu: 0.0.40
codegen_flags: <defaults>
</compile_context>

<pallas_src>
import jax
import jax.numpy as jnp
from jax.experimental import pallas as pl
from jax.experimental.pallas import tpu as pltpu

K_IN = 28 * 28       # 784 — streamed unpadded (block last dim == full array dim)
N_OUT = 10
N_PAD = 128          # lane-dense output width
MAX_TB = 2048        # batch tile cap (rows); bf16 x tile ≈ 3.1 MiB


def mlp_kernel(x_ref, w1_ref, b1_ref, w2_ref, b2_ref, w3_ref, b3_ref, o_ref):
    # Layer 1: (TB, 784)bf16 @ (784, 64)bf16 -> f32 acc, +bias, ReLU (all in f32)
    h1 = jnp.dot(x_ref[...], w1_ref[...], preferred_element_type=jnp.float32)
    h1 = jnp.maximum(h1 + b1_ref[...], 0.0)
    # Layer 2: (TB, 64) @ (64, 32) -> f32 acc
    h2 = jnp.dot(h1.astype(w2_ref.dtype), w2_ref[...], preferred_element_type=jnp.float32)
    h2 = jnp.maximum(h2 + b2_ref[...], 0.0)
    # Layer 3: (TB, 32) @ (32, 128) -> f32 acc (lane-dense padded output)
    out = jnp.dot(h2.astype(w3_ref.dtype), w3_ref[...], preferred_element_type=jnp.float32)
    o_ref[...] = (out + b3_ref[...]).astype(o_ref.dtype)


def _round_up(n, m):
    return ((n + m - 1) // m) * m


def mlp_forward(x, params):
    """x: (B, 1, 28, 28) float32 (NCHW). Returns logits (B, 10) float32."""
    w1, b1, w2, b2, w3, b3 = params
    B = x.shape[0]

    # nn.Flatten() + bf16 cast (the only per-element pass over x outside the kernel).
    x_flat = x.reshape(B, K_IN).astype(jnp.bfloat16)

    # Pad batch only to a sublane multiple; split into near-equal tiles so no tile is
    # mostly padding. Keep the tile count even (when >1) so v7x uses both TensorCores.
    B8 = _round_up(B, 8)
    n_tiles = max(1, pl.cdiv(B8, MAX_TB))
    if n_tiles > 1 and n_tiles % 2:
        n_tiles += 1
    TB = _round_up(pl.cdiv(B8, n_tiles), 8)
    B_pad = TB * n_tiles

    x_p = jnp.pad(x_flat, ((0, B_pad - B), (0, 0)))   # at most TB*n_tiles - B ≲ 8*n_tiles rows

    # bf16 weights (MXU inputs); f32 biases (added post-accumulation). Zero-pad layer-3
    # columns 10 -> 128 for unmasked lane-dense stores.
    w1_b = w1.astype(jnp.bfloat16)
    w2_b = w2.astype(jnp.bfloat16)
    w3_b = jnp.pad(w3, ((0, 0), (0, N_PAD - N_OUT))).astype(jnp.bfloat16)
    b1_f = b1.astype(jnp.float32)
    b2_f = b2.astype(jnp.float32)
    b3_f = jnp.pad(b3, ((0, 0), (0, N_PAD - N_OUT))).astype(jnp.float32)

    # Weights/biases: full-shape blocks, constant index map -> resident in VMEM.
    resident = lambda arr: pl.BlockSpec(arr.shape, lambda i: (0,) * arr.ndim)

    out_padded = pl.pallas_call(
        mlp_kernel,
        out_shape=jax.ShapeDtypeStruct((B_pad, N_PAD), jnp.float32),
        grid=(n_tiles,),
        in_specs=[
            pl.BlockSpec((TB, K_IN), lambda i: (i, 0)),   # x: streamed per batch tile, unpadded K
            resident(w1_b), resident(b1_f),
            resident(w2_b), resident(b2_f),
            resident(w3_b), resident(b3_f),
        ],
        out_specs=pl.BlockSpec((TB, N_PAD), lambda i: (i, 0)),
        compiler_params=pltpu.CompilerParams(
            dimension_semantics=("parallel",),          # megacore sharding on v7x
            vmem_limit_bytes=32 * 1024 * 1024,          # safe on v5e/v6e/v7x
        ),
    )(x_p, w1_b, b1_f, w2_b, b2_f, w3_b, b3_f)

    # TODO(synk): if the consumer can take (B_pad, 128) padded logits, drop this slice
    # to save one small relayout pass.
    return out_padded[:B, :N_OUT]


def init_params(key):
    """Deterministic parameter init (uniform, PyTorch Linear-style fan_in bound)."""
    dims = [(K_IN, 64), (64, 32), (32, N_OUT)]
    params = []
    for i, (fan_in, fan_out) in enumerate(dims):
        kw, kb = jax.random.split(jax.random.fold_in(key, i))
        bound = 1.0 / (fan_in ** 0.5)
        w = jax.random.uniform(kw, (fan_in, fan_out), jnp.float32, -bound, bound)
        b = jax.random.uniform(kb, (1, fan_out), jnp.float32, -bound, bound)
        params += [w, b]
    return tuple(params)


def mlp_forward_ref(x, params):
    """Plain-JAX f32 reference for correctness checking."""
    w1, b1, w2, b2, w3, b3 = params
    h = x.reshape(x.shape[0], -1)
    h = jnp.maximum(h @ w1 + b1, 0.0)
    h = jnp.maximum(h @ w2 + b2, 0.0)
    return h @ w3 + b3


if __name__ == "__main__":
    key = jax.random.PRNGKey(0)
    kx, kp = jax.random.split(key)

    B = 8
    x = jax.random.normal(kx, (B, 1, 28, 28), dtype=jnp.float32)  # NCHW, MNIST-like
    params = init_params(kp)

    out = mlp_forward(x, params)
    out = jax.block_until_ready(out)

    ref = mlp_forward_ref(x, params)
    assert out.shape == (B, N_OUT), out.shape
    # bf16 inputs -> relaxed tolerance vs the f32 reference.
    assert jnp.allclose(out, ref, atol=5e-2, rtol=5e-2), "mismatch vs reference"

    # TODO(synk): compute_l2_loss (sum of squared weights) is a training-time helper,
    # not part of the forward pass; omitted from the kernel.
    print("KERNEL_OK")
</pallas_src>

<mosaic_0001>
module attributes {stable_mosaic.version = 11 : i64} {
  func.func @mlp_kernel(%arg0: i32, %arg1: memref<8x784xbf16, #tpu.memory_space<vmem>>, %arg2: memref<784x64xbf16, #tpu.memory_space<vmem>>, %arg3: memref<1x64xf32, #tpu.memory_space<vmem>>, %arg4: memref<64x32xbf16, #tpu.memory_space<vmem>>, %arg5: memref<1x32xf32, #tpu.memory_space<vmem>>, %arg6: memref<32x128xbf16, #tpu.memory_space<vmem>>, %arg7: memref<1x128xf32, #tpu.memory_space<vmem>>, %arg8: memref<8x128xf32, #tpu.memory_space<vmem>>) attributes {dimension_semantics = [#tpu.dimension_semantics<parallel>], iteration_bounds = array<i64: 1>, scalar_prefetch = 0 : i64, scratch_operands = 0 : i64, tpu.core_type = #tpu.core_type<tc>, window_params = [{transform_indices = @transform_0, window_bounds = array<i64: 8, 784>}, {pipeline_mode = #tpu.pipeline_mode<synchronous>, transform_indices = @transform_1, window_bounds = array<i64: 784, 64>}, {pipeline_mode = #tpu.pipeline_mode<synchronous>, transform_indices = @transform_2, window_bounds = array<i64: 1, 64>}, {pipeline_mode = #tpu.pipeline_mode<synchronous>, transform_indices = @transform_3, window_bounds = array<i64: 64, 32>}, {pipeline_mode = #tpu.pipeline_mode<synchronous>, transform_indices = @transform_4, window_bounds = array<i64: 1, 32>}, {pipeline_mode = #tpu.pipeline_mode<synchronous>, transform_indices = @transform_5, window_bounds = array<i64: 32, 128>}, {pipeline_mode = #tpu.pipeline_mode<synchronous>, transform_indices = @transform_6, window_bounds = array<i64: 1, 128>}, {transform_indices = @transform_7, window_bounds = array<i64: 8, 128>}]} {
    %c0 = arith.constant 0 : index
    %c0_0 = arith.constant 0 : index
    %0 = vector.load %arg1[%c0, %c0_0] : memref<8x784xbf16, #tpu.memory_space<vmem>>, vector<8x784xbf16>
    %c0_1 = arith.constant 0 : index
    %c0_2 = arith.constant 0 : index
    %1 = vector.load %arg2[%c0_1, %c0_2] : memref<784x64xbf16, #tpu.memory_space<vmem>>, vector<784x64xbf16>
    %cst = arith.constant dense<0.000000e+00> : vector<8x64xf32>
    %2 = tpu.matmul %0, %1, %cst {dimension_numbers = #tpu.dot_dimension_numbers<[1], [0], [0], [1], [0, 0, 1, 1], [], []>} : vector<8x784xbf16>, vector<784x64xbf16>, vector<8x64xf32> -> vector<8x64xf32>
    %c0_3 = arith.constant 0 : index
    %c0_4 = arith.constant 0 : index
    %3 = vector.load %arg3[%c0_3, %c0_4] : memref<1x64xf32, #tpu.memory_space<vmem>>, vector<1x64xf32>
    %4 = vector.broadcast %3 : vector<1x64xf32> to vector<8x64xf32>
    %5 = arith.addf %2, %4 : vector<8x64xf32>
    %cst_5 = arith.constant 0.000000e+00 : f32
    %6 = vector.broadcast %cst_5 : f32 to vector<8x64xf32>
    %7 = arith.maximumf %5, %6 : vector<8x64xf32>
    %8 = arith.truncf %7 : vector<8x64xf32> to vector<8x64xbf16>
    %c0_6 = arith.constant 0 : index
    %c0_7 = arith.constant 0 : index
    %9 = vector.load %arg4[%c0_6, %c0_7] : memref<64x32xbf16, #tpu.memory_space<vmem>>, vector<64x32xbf16>
    %cst_8 = arith.constant dense<0.000000e+00> : vector<8x32xf32>
    %10 = tpu.matmul %8, %9, %cst_8 {dimension_numbers = #tpu.dot_dimension_numbers<[1], [0], [0], [1], [0, 0, 1, 1], [], []>} : vector<8x64xbf16>, vector<64x32xbf16>, vector<8x32xf32> -> vector<8x32xf32>
    %c0_9 = arith.constant 0 : index
    %c0_10 = arith.constant 0 : index
    %11 = vector.load %arg5[%c0_9, %c0_10] : memref<1x32xf32, #tpu.memory_space<vmem>>, vector<1x32xf32>
    %12 = vector.broadcast %11 : vector<1x32xf32> to vector<8x32xf32>
    %13 = arith.addf %10, %12 : vector<8x32xf32>
    %cst_11 = arith.constant 0.000000e+00 : f32
    %14 = vector.broadcast %cst_11 : f32 to vector<8x32xf32>
    %15 = arith.maximumf %13, %14 : vector<8x32xf32>
    %16 = arith.truncf %15 : vector<8x32xf32> to vector<8x32xbf16>
    %c0_12 = arith.constant 0 : index
    %c0_13 = arith.constant 0 : index
    %17 = vector.load %arg6[%c0_12, %c0_13] : memref<32x128xbf16, #tpu.memory_space<vmem>>, vector<32x128xbf16>
    %cst_14 = arith.constant dense<0.000000e+00> : vector<8x128xf32>
    %18 = tpu.matmul %16, %17, %cst_14 {dimension_numbers = #tpu.dot_dimension_numbers<[1], [0], [0], [1], [0, 0, 1, 1], [], []>} : vector<8x32xbf16>, vector<32x128xbf16>, vector<8x128xf32> -> vector<8x128xf32>
    %c0_15 = arith.constant 0 : index
    %c0_16 = arith.constant 0 : index
    %19 = vector.load %arg7[%c0_15, %c0_16] : memref<1x128xf32, #tpu.memory_space<vmem>>, vector<1x128xf32>
    %20 = vector.broadcast %19 : vector<1x128xf32> to vector<8x128xf32>
    %21 = arith.addf %18, %20 : vector<8x128xf32>
    %c0_17 = arith.constant 0 : index
    %c0_18 = arith.constant 0 : index
    %22 = vector.load %arg8[%c0_17, %c0_18] : memref<8x128xf32, #tpu.memory_space<vmem>>, vector<8x128xf32>
    tpu.vector_store %arg8[%c0_17, %c0_18], %21 {strides = array<i32>} : memref<8x128xf32, #tpu.memory_space<vmem>>, vector<8x128xf32>,
    return
  }
  func.func @transform_0(%arg0: i32) -> (i32, i32) {
    %c0_i32 = arith.constant 0 : i32
    %c0_i32_0 = arith.constant 0 : i32
    return %arg0, %c0_i32 : i32, i32
  }
  func.func @transform_1(%arg0: i32) -> (i32, i32) {
    %c0_i32 = arith.constant 0 : i32
    %c0_i32_0 = arith.constant 0 : i32
    %c0_i32_1 = arith.constant 0 : i32
    return %c0_i32, %c0_i32_0 : i32, i32
  }
  func.func @transform_2(%arg0: i32) -> (i32, i32) {
    %c0_i32 = arith.constant 0 : i32
    %c0_i32_0 = arith.constant 0 : i32
    %c0_i32_1 = arith.constant 0 : i32
    return %c0_i32, %c0_i32_0 : i32, i32
  }
  func.func @transform_3(%arg0: i32) -> (i32, i32) {
    %c0_i32 = arith.constant 0 : i32
    %c0_i32_0 = arith.constant 0 : i32
    %c0_i32_1 = arith.constant 0 : i32
    return %c0_i32, %c0_i32_0 : i32, i32
  }
  func.func @transform_4(%arg0: i32) -> (i32, i32) {
    %c0_i32 = arith.constant 0 : i32
    %c0_i32_0 = arith.constant 0 : i32
    %c0_i32_1 = arith.constant 0 : i32
    return %c0_i32, %c0_i32_0 : i32, i32
  }
  func.func @transform_5(%arg0: i32) -> (i32, i32) {
    %c0_i32 = arith.constant 0 : i32
    %c0_i32_0 = arith.constant 0 : i32
    %c0_i32_1 = arith.constant 0 : i32
    return %c0_i32, %c0_i32_0 : i32, i32
  }
  func.func @transform_6(%arg0: i32) -> (i32, i32) {
    %c0_i32 = arith.constant 0 : i32
    %c0_i32_0 = arith.constant 0 : i32
    %c0_i32_1 = arith.constant 0 : i32
    return %c0_i32, %c0_i32_0 : i32, i32
  }
  func.func @transform_7(%arg0: i32) -> (i32, i32) {
    %c0_i32 = arith.constant 0 : i32
    %c0_i32_0 = arith.constant 0 : i32
    return %arg0, %c0_i32 : i32, i32
  }
}

</mosaic_0001>

<bundles_post_ra>
// kernel: tpu_custom_call.1
= control target key start
LH: loop header
LB: loop body
LE: loop exit
PB: predicated region body
PF: predicated region fallthrough
CT: control target
= control target key end

     0   :  { %s1196_s0 = inlined_call_operand.vmem [shape: bf16[8,784], index: 0, kind: input, shape index: {}]   ;;  %s1197_s1 = inlined_call_operand.vmem [shape: bf16[784,64], index: 1, kind: input, shape index: {}]   ;;  %s1198_s2 = inlined_call_operand.vmem [shape: f32[1,64], index: 2, kind: input, shape index: {}]   ;;  %s1199_s3 = inlined_call_operand.vmem [shape: bf16[64,32], index: 3, kind: input, shape index: {}]   ;;  %s1200_s4 = inlined_call_operand.vmem [shape: f32[1,32], index: 4, kind: input, shape index: {}]   ;;  %s1201_s5 = inlined_call_operand.vmem [shape: bf16[32,128], index: 5, kind: input, shape index: {}]   ;;  %s1202_s6 = inlined_call_operand.vmem [shape: f32[1,128], index: 6, kind: input, shape index: {}]   ;;  %s1203_s7 = inlined_call_operand.hbm [shape: f32[8,128], index: 7, kind: output, shape index: {}]  }
   0x1   :  { %v888_v0 = vld [vmem:[%s1197_s1 + $0x38] sm:$0xff]  ;;  %v887_v3 = vld [vmem:[%s1197_s1 + $0x30] sm:$0xff]  ;;  %v886_v8 = vld [vmem:[%s1197_s1 + $0x28] sm:$0xff] }
   0x2   :  { %v896_v1 = vld [vmem:[%s1197_s1 + $0x78] sm:$0xff]  ;;  %456 = vmatpush.bf16.msra.mxu0 %v888_v0  ;;  %v895_v4 = vld [vmem:[%s1197_s1 + $0x70] sm:$0xff]  ;;  %v894_v9 = vld [vmem:[%s1197_s1 + $0x68] sm:$0xff] }
   0x3   :  { %v904_v2 = vld [vmem:[%s1197_s1 + $0xb8] sm:$0xff]  ;;  %469 = vmatpush.bf16.msra.mxu1 %v896_v1  ;;  %v903_v5 = vld [vmem:[%s1197_s1 + $0xb0] sm:$0xff]  ;;  %v902_v10 = vld [vmem:[%s1197_s1 + $0xa8] sm:$0xff] }
   0x4   :  { %482 = vmatpush.bf16.msra.mxu2 %v904_v2  ;;  %v912_v6 = vld [vmem:[%s1197_s1 + $0xf8] sm:$0xff]  ;;  %v911_v7 = vld [vmem:[%s1197_s1 + $0xf0] sm:$0xff]  ;;  %v910_v11 = vld [vmem:[%s1197_s1 + $0xe8] sm:$0xff] }
   0x5   :  { %495 = vmatpush.bf16.msra.mxu3 %v912_v6  ;;  %v885_v12 = vld [vmem:[%s1197_s1 + $0x20] sm:$0xff]  ;;  %v884_v16 = vld [vmem:[%s1197_s1 + $0x18] sm:$0xff] }
   0x6   :  { %457 = vmatpush.bf16.msra.mxu0 %v887_v3  ;;  %v893_v13 = vld [vmem:[%s1197_s1 + $0x60] sm:$0xff]  ;;  %v892_v17 = vld [vmem:[%s1197_s1 + $0x58] sm:$0xff] }
   0x7   :  { %470 = vmatpush.bf16.msra.mxu1 %v895_v4  ;;  %v901_v14 = vld [vmem:[%s1197_s1 + $0xa0] sm:$0xff]  ;;  %v900_v18 = vld [vmem:[%s1197_s1 + $0x98] sm:$0xff] }
   0x8   :  { %483 = vmatpush.bf16.msra.mxu2 %v903_v5  ;;  %v909_v15 = vld [vmem:[%s1197_s1 + $0xe0] sm:$0xff] }
   0x9   :  { %496 = vmatpush.bf16.msra.mxu3 %v911_v7 }
   0xa   :  { %458 = vmatpush.bf16.msra.mxu0 %v886_v8 }
   0xb   :  { %471 = vmatpush.bf16.msra.mxu1 %v894_v9 }
   0xc   :  { %484 = vmatpush.bf16.msra.mxu2 %v902_v10 }
   0xd   :  { %497 = vmatpush.bf16.msra.mxu3 %v910_v11 }
   0xe   :  { %459 = vmatpush.bf16.msra.mxu0 %v885_v12 }
   0xf   :  { %472 = vmatpush.bf16.msra.mxu1 %v893_v13 }
  0x10   :  { %485 = vmatpush.bf16.msra.mxu2 %v901_v14 }
  0x11   :  { %12 = vsyncpa [#allocation3], 0  ;;  %498 = vmatpush.bf16.msra.mxu3 %v909_v15  ;;  %v908_v19 = vld [vmem:[%s1197_s1 + $0xd8] sm:$0xff]  ;;  %v883_v20 = vld [vmem:[%s1197_s1 + $0x10] sm:$0xff]  ;;  %vm452_vm0 = vcmask 130048   ;;  %vm585_vm1 = vcmask 523264  }
  0x12   :  { %460 = vmatpush.bf16.msra.mxu0 %v884_v16  ;;  %v891_v21 = vld [vmem:[%s1197_s1 + $0x50] sm:$0xff]  ;;  %v882_v24 = vld [vmem:[%s1197_s1 + $0x8] sm:$0xff]  ;;  %v28_v26 = vld [vmem:[%s1196_s0] sm:$0xff]  ;;  %vm624_vm2 = vcmask 261120   ;;  %s966_s28 = smov [#allocation2]   ;;  %s649_s9 = sshll.u32 %s1203_s7, 4  ;;  %s650_s9 = int_to_ptr.hbm [resolvable:$true] %s649_s9 }
  0x13   :  { %473 = vmatpush.bf16.msra.mxu1 %v892_v17  ;;  %v899_v22 = vld [vmem:[%s1197_s1 + $0x90] sm:$0xff]  ;;  %v890_v25 = vld [vmem:[%s1197_s1 + $0x48] sm:$0xff]  ;;  %v138_v29 = vunpack.c.l.b16 %v28_v26  ;;  %v139_v31 = vunpack.c.h.b16 %v28_v26  ;;  %v881_v32 = vld [vmem:[%s1197_s1] sm:$0xff]  ;;  %s647_s29 = sshll.u32 %s966_s28, 4  ;;  %s648_s29 = int_to_ptr.vmem [resolvable:$true] %s647_s29 }
  0x14   :  { %486 = vmatpush.bf16.msra.mxu2 %v900_v18  ;;  %v907_v23 = vld [vmem:[%s1197_s1 + $0xd0] sm:$0xff]  ;;  %v898_v27 = vld [vmem:[%s1197_s1 + $0x88] sm:$0xff]  ;;  %v889_v33 = vld [vmem:[%s1197_s1 + $0x40] sm:$0xff] }
  0x15   :  { %499 = vmatpush.bf16.msra.mxu3 %v908_v19  ;;  %v29_v28 = vld [vmem:[%s1196_s0 + $0x8] sm:$0xff]  ;;  %v920_v34 = vld [vmem:[%s1197_s1 + $0x138] sm:$0xff]  ;;  %v897_v36 = vld [vmem:[%s1197_s1 + $0x80] sm:$0xff]  ;;  %v145_v38 = vpack.c.b16 %v138_v29, %v138_v29  ;;  %v146_v39 = vpack.c.b16 %v139_v31, %v139_v31 }
  0x16   :  { %461 = vmatpush.bf16.msra.mxu0 %v883_v20  ;;  %v906_v30 = vld [vmem:[%s1197_s1 + $0xc8] sm:$0xff]  ;;  %v928_v35 = vld [vmem:[%s1197_s1 + $0x178] sm:$0xff]  ;;  %v140_v37 = vunpack.c.l.b16 %v29_v28  ;;  %v141_v40 = vunpack.c.h.b16 %v29_v28  ;;  %v905_v41 = vld [vmem:[%s1197_s1 + $0xc0] sm:$0xff] }
  0x17   :  { %474 = vmatpush.bf16.msra.mxu1 %v891_v21  ;;  %v929_v42 = vld [vmem:[%s1197_s1 + $0x180] sm:$0xff]  ;;  %v919_v43 = vld [vmem:[%s1197_s1 + $0x130] sm:$0xff]  ;;  %v918_v47 = vld [vmem:[%s1197_s1 + $0x128] sm:$0xff] }
  0x18   :  { %487 = vmatpush.bf16.msra.mxu2 %v899_v22  ;;  %v927_v44 = vld [vmem:[%s1197_s1 + $0x170] sm:$0xff]  ;;  %v147_v45 = vpack.c.b16 %v140_v37, %v140_v37  ;;  %v148_v46 = vpack.c.b16 %v141_v40, %v141_v40  ;;  %v926_v48 = vld [vmem:[%s1197_s1 + $0x168] sm:$0xff]  ;;  %v917_v49 = vld [vmem:[%s1197_s1 + $0x120] sm:$0xff] }
  0x19   :  { %500 = vmatpush.bf16.msra.mxu3 %v907_v23  ;;  %v925_v50 = vld [vmem:[%s1197_s1 + $0x160] sm:$0xff]  ;;  %v31_v51 = vld [vmem:[%s1196_s0 + $0x18] sm:$0xf]  ;;  %v915_v55 = vld [vmem:[%s1197_s1 + $0x110] sm:$0xff] }
  0x1a   :  { %462 = vmatpush.bf16.msra.mxu0 %v882_v24  ;;  %v916_v52 = vld [vmem:[%s1197_s1 + $0x118] sm:$0xff]  ;;  %v144_v54 = vunpack.c.l.b16 %v31_v51  ;;  %v923_v56 = vld [vmem:[%s1197_s1 + $0x150] sm:$0xff]  ;;  %v914_v58 = vld [vmem:[%s1197_s1 + $0x108] sm:$0xff] }
  0x1b   :  { %475 = vmatpush.bf16.msra.mxu1 %v890_v25  ;;  %v924_v53 = vld [vmem:[%s1197_s1 + $0x158] sm:$0xff]  ;;  %v922_v59 = vld [vmem:[%s1197_s1 + $0x148] sm:$0xff]  ;;  %v30_v60 = vld [vmem:[%s1196_s0 + $0x10] sm:$0xff] }
  0x1c   :  { %488 = vmatpush.bf16.msra.mxu2 %v898_v27  ;;  %v151_v57 = vpack.c.b16 %v144_v54, %v144_v54  ;;  %v142_v61 = vunpack.c.l.b16 %v30_v60  ;;  %v143_v62 = vunpack.c.h.b16 %v30_v60  ;;  %v913_v63 = vld [vmem:[%s1197_s1 + $0x100] sm:$0xff]  ;;  %v933_v3 = vld [vmem:[%s1199_s3 + $0x18] sm:$0xff]  ;;  %v932_v4 = vld [vmem:[%s1199_s3 + $0x10] sm:$0xff] }
  0x1d   :  { %501 = vmatpush.bf16.msra.mxu3 %v906_v30  ;;  %v921_v0 = vld [vmem:[%s1197_s1 + $0x140] sm:$0xff]  ;;  %v931_v5 = vld [vmem:[%s1199_s3 + $0x8] sm:$0xff] }
  0x1e   :  { %463 = vmatpush.bf16.msra.mxu0 %v881_v32  ;;  %v149_v1 = vpack.c.b16 %v142_v61, %v142_v61  ;;  %v150_v2 = vpack.c.b16 %v143_v62, %v143_v62  ;;  %v930_v8 = vld [vmem:[%s1199_s3] sm:$0xff]  ;;  %v935_v11 = vld [vmem:[%s1201_s5 + $0x8] sm:$0xff] }
  0x1f   :  { %476 = vmatpush.bf16.msra.mxu1 %v889_v33  ;;  %v934_v14 = vld [vmem:[%s1201_s5] sm:$0xff] }
  0x20   :  { %489 = vmatpush.bf16.msra.mxu2 %v897_v36  ;;  %v937_v15 = vld [vmem:[%s1198_s2] ss:$0 sm:$0xff] }
  0x21   :  { %464 = vmatmul.bf16.vlgmr.msra.gmra.mxu0 %v145_v38  ;;  %502 = vmatpush.bf16.msra.mxu3 %v905_v41  ;;  %v938_v33 = vld [vmem:[%s1200_s4] ss:$0 sm:$0xff] }
  0x22   :  { %508 = vmatpush.bf16.msrb.mxu0 %v920_v34  ;;  %477 = vmatmul.bf16.vlgmr.msra.gmra.mxu1 %v146_v39  ;;  %v939_v39 = vld [vmem:[%s1202_s6] ss:$0 sm:$0xff] }
  0x23   :  { %521 = vmatpush.bf16.msrb.mxu1 %v928_v35  ;;  %490 = vmatmul.bf16.vlgmr.msra.gmra.mxu2 %v147_v45 }
  0x24   :  { %541 = vmatpush.bf16.msrb.mxu2 %v929_v42  ;;  %503 = vmatmul.bf16.vlgmr.msra.gmra.mxu3 %v148_v46 }
  0x25   :  { %593 = vmatpush.bf16.msrb.mxu3 %v933_v3 }
  0x26   :  { %509 = vmatpush.bf16.msrb.mxu0 %v919_v43 }
  0x27   :  { %522 = vmatpush.bf16.msrb.mxu1 %v927_v44 }
  0x28   :  { %634 = vmatpush.bf16.msra.mxu2 %v935_v11 }
  0x29   :  { %594 = vmatpush.bf16.msrb.mxu3 %v932_v4 }
  0x2a   :  { %510 = vmatpush.bf16.msrb.mxu0 %v918_v47 }
  0x2b   :  { %523 = vmatpush.bf16.msrb.mxu1 %v926_v48 }
  0x2c   :  { %635 = vmatpush.bf16.msra.mxu2 %v934_v14 }
  0x2d   :  { %595 = vmatpush.bf16.msrb.mxu3 %v931_v5 }
  0x2e   :  { %511 = vmatpush.bf16.msrb.mxu0 %v917_v49 }
  0x2f   :  { %524 = vmatpush.bf16.msrb.mxu1 %v925_v50 }
  0x31   :  { %596 = vmatpush.bf16.msrb.mxu3 %v930_v8 }
  0x32   :  { %512 = vmatpush.bf16.msrb.mxu0 %v916_v52 }
  0x33   :  { %525 = vmatpush.bf16.msrb.mxu1 %v924_v53  ;;  %854 = vmatmul.msk.bf16.vlgmr.msrb.gmra.mxu2 %vm452_vm0, %v151_v57 }
  0x36   :  { %513 = vmatpush.bf16.msrb.mxu0 %v915_v55 }
  0x37   :  { %526 = vmatpush.bf16.msrb.mxu1 %v923_v56 }
  0x3a   :  { %514 = vmatpush.bf16.msrb.mxu0 %v914_v58 }
  0x3b   :  { %527 = vmatpush.bf16.msrb.mxu1 %v922_v59 }
  0x3e   :  { %515 = vmatpush.bf16.msrb.mxu0 %v913_v63 }
  0x3f   :  { %528 = vmatpush.bf16.msrb.mxu1 %v921_v0 }
  0x41   :  { %516 = vmatmul.bf16.vlgmr.msrb.gmra.mxu0 %v149_v1 }
  0x42   :  { %529 = vmatmul.bf16.vlgmr.msrb.gmra.mxu1 %v150_v2 }
  0x9e   :  { %v465_v6 = vpop.f32.mrf.mxu0 }
  0x9f   :  { %v478_v7 = vpop.f32.mrf.mxu1  ;;  %v466_v16 = vadd.f32 %v937_v15, %v465_v6 }
  0xa1   :  { %v479_v19 = vadd.f32 %v478_v7, %v466_v16 }
  0xa6   :  { %v467_v9 = vpop.f32.mrf.mxu0  ;;  %v491_v12 = vpop.f32.mrf.mxu2 }
  0xa7   :  { %v480_v10 = vpop.f32.mrf.mxu1  ;;  %v504_v13 = vpop.f32.mrf.mxu3  ;;  %v492_v20 = vadd.f32 %v491_v12, %v479_v19 }
  0xa9   :  { %v505_v22 = vadd.f32 %v504_v13, %v492_v20 }
  0xae   :  { %v493_v17 = vpop.f32.mrf.mxu2 }
  0xaf   :  { %v506_v18 = vpop.f32.mrf.mxu3 }
  0xb6   :  { %v543_v21 = vpop.f32.mrf.mxu2 }
  0xbe   :  { %v517_v23 = vpop.f32.mrf.mxu0  ;;  %v545_v27 = vpop.f32.mrf.mxu2 }
  0xbf   :  { %v530_v24 = vpop.f32.mrf.mxu1  ;;  %v518_v25 = vadd.f32 %v517_v23, %v505_v22 }
  0xc1   :  { %v531_v26 = vadd.f32 %v530_v24, %v518_v25 }
  0xc3   :  { %v544_v28 = vadd.f32 %v543_v21, %v531_v26 }
  0xc5   :  { %v547_v29 = vmax.f32 %v544_v28, 0.0 }
  0xc6   :  { %v519_v30 = vpop.f32.mrf.mxu0 }
  0xc7   :  { %v532_v31 = vpop.f32.mrf.mxu1  ;;  %v548_v32 = vpack.c.bf16 %v547_v29, %v547_v29 }
  0xc9   :  { %871 = vmatmul.msk.bf16.vlgmr.msrb.gmra.mxu3 %vm585_vm1, %v548_v32 }
 0x14c   :  { %v598_v34 = vpop.f32.mrf.mxu3 }
 0x14d   :  { %v599_v35 = vadd.f32 %v938_v33, %v598_v34 }
 0x14f   :  { %v602_v36 = vmax.f32 %v599_v35, 0.0 }
 0x151   :  { %v603_v37 = vpack.c.bf16 %v602_v36, %v602_v36 }
 0x153   :  { %880 = vmatmul.msk.bf16.vlgmr.msra.gmra.mxu2 %vm624_vm2, %v603_v37 }
 0x154   :  { %v600_v38 = vpop.f32.mrf.mxu3 }
 0x1d6   :  { %v637_v40 = vpop.f32.mrf.mxu2 }
 0x1d7   :  { %v638_v41 = vadd.f32 %v939_v39, %v637_v40 }
 0x1d9   :  { %641 = vst [vmem:[#allocation2] sm:$0xff] %v638_v41 }
 0x1da   :  { %652 = dma.vmem_to_hbm [thread:$0]  %s648_s29, 128, %s650_s9, [#allocation3]  }
 0x1de   :  { %v639_v42 = vpop.f32.mrf.mxu2 }
 0x1df   :  { %964 = dma.done.wait [#allocation3], 128  }
 0x1e0   :  { %965 = vsyncadd [#allocation3], 4294967168 }
 0x1e1   :  { %657 = vsyncpa [#allocation3], 1 }

</bundles_post_ra>
